<compile_context>
chip_gen: v7x
topology: tpu7x:2x2x1
jax: 0.10.0
libtpu: 0.0.40
codegen_flags: <defaults>
</compile_context>

<pallas_src>
from functools import partial

import numpy as np
import jax
import jax.numpy as jnp
from jax.experimental import pallas as pl
from jax.experimental.pallas import tpu as pltpu

INPUT_SIZE = 8
HIDDEN = 32                      # classical_layers = [32]
N_QUBITS = 4
QUANTUM_DEPTH = 1
PER_QUBIT = QUANTUM_DEPTH * 3    # rotation params per qubit
N_QPARAMS = N_QUBITS * PER_QUBIT # 12
BATCH = 8
BN_EPS = 1e-5

# ---- parameter-slab layout: (SLAB_ROWS, 128) f32, single full-lane DMA ------------
LANES = 128
# rows 0:32
COL_W1T = 0                      # cols 0:8   w1^T           (32, 8)
COL_B1 = 8                       # col  8     b1 column      (32,)
COL_G = 9                        # col  9     BN gamma col   (32,)
COL_BE = 10                      # col 10     BN beta  col   (32,)
# rows 32:44  (rotation-major row order: row j*4+q holds theta_j of qubit q)
ROW_W2T = HIDDEN                 # rows 32:44, cols 0:32   w2^T permuted  (12, 32)
COL_B2 = 32                      # rows 32:44, col 32      b2 column (permuted)
COL_WP = 33                      # rows 32:36, col 33      post_process weight column
COL_BP = 34                      # row  32   , col 34      post_process bias
SLAB_ROWS = 48                   # 44 rows of payload, padded to a sublane multiple


def _stats_kernel(x_ref, p_ref, part_ref, *, b_true, tb, mxu_dtype):
    """Pass 1: per-tile masked sum / sum-of-squares of h = relu(w1^T x + b1)."""
    x = x_ref[...]                                       # (8, TB) f32, batch on lanes
    w1t = p_ref[0:HIDDEN, COL_W1T:COL_W1T + INPUT_SIZE]  # (32, 8)
    b1c = p_ref[0:HIDDEN, COL_B1:COL_B1 + 1]             # (32, 1)

    h = jnp.dot(w1t.astype(mxu_dtype), x.astype(mxu_dtype),
                preferred_element_type=jnp.float32) + b1c
    h = jnp.maximum(h, 0.0)                              # (32, TB)

    # mask out zero-padded batch columns so batch stats use exactly b_true samples
    col = jax.lax.broadcasted_iota(jnp.int32, (1, tb), 1) + pl.program_id(0) * tb
    valid = (col < b_true).astype(jnp.float32)           # (1, TB)
    hm = h * valid
    s = jnp.sum(hm, axis=1, keepdims=True)               # (32, 1)
    ss = jnp.sum(hm * hm, axis=1, keepdims=True)         # (32, 1)
    part_ref[...] = jnp.concatenate([s, ss], axis=1)[None]   # (1, 32, 2)


def _main_kernel(x_ref, p_ref, part_ref, o_ref, *, b_true, mxu_dtype):
    """Pass 2: BN (full-batch stats) + Linear2 + quantum surrogate + post_process."""
    x = x_ref[...]                                       # (8, TB)
    w1t = p_ref[0:HIDDEN, COL_W1T:COL_W1T + INPUT_SIZE]  # (32, 8)
    b1c = p_ref[0:HIDDEN, COL_B1:COL_B1 + 1]             # (32, 1)
    gam = p_ref[0:HIDDEN, COL_G:COL_G + 1]               # (32, 1)
    bet = p_ref[0:HIDDEN, COL_BE:COL_BE + 1]             # (32, 1)
    w2t = p_ref[ROW_W2T:ROW_W2T + N_QPARAMS, 0:HIDDEN]   # (12, 32) rotation-major rows
    b2c = p_ref[ROW_W2T:ROW_W2T + N_QPARAMS, COL_B2:COL_B2 + 1]   # (12, 1)
    wpc = p_ref[ROW_W2T:ROW_W2T + N_QUBITS, COL_WP:COL_WP + 1]    # (4, 1)
    bp = p_ref[ROW_W2T:ROW_W2T + 1, COL_BP:COL_BP + 1]            # (1, 1)

    # recompute h for this tile (cheaper than an HBM round-trip of h)
    h = jnp.dot(w1t.astype(mxu_dtype), x.astype(mxu_dtype),
                preferred_element_type=jnp.float32) + b1c
    h = jnp.maximum(h, 0.0)                              # (32, TB)

    # full-batch BN statistics from the pass-1 partials (one-pass sum / sum-of-squares)
    sums = jnp.sum(part_ref[...], axis=0)                # (32, 2)
    mean = sums[:, 0:1] * (1.0 / b_true)                 # (32, 1)
    var = sums[:, 1:2] * (1.0 / b_true) - mean * mean    # biased var (PyTorch BN norm)
    scale = gam * jax.lax.rsqrt(var + BN_EPS)            # (32, 1)
    shift = bet - mean * scale                           # (32, 1)
    hbn = h * scale + shift                              # column-broadcast FMA

    # final classical Linear -> quantum rotation params (rotation-major rows)
    qp = jnp.dot(w2t.astype(mxu_dtype), hbn.astype(mxu_dtype),
                 preferred_element_type=jnp.float32) + b2c    # (12, TB)

    # quantum surrogate: <Z_q> = prod_j cos(theta_{q,j})  (see TODO at top)
    c = jnp.cos(qp)                                      # (12, TB)
    z = c[0:N_QUBITS, :] * c[N_QUBITS:2 * N_QUBITS, :] * c[2 * N_QUBITS:3 * N_QUBITS, :]

    # post_process Linear(4, 1) as a VPU/XLU epilogue (no MXU pass)
    o_ref[...] = jnp.sum(z * wpc, axis=0, keepdims=True) + bp    # (1, TB), lane-dense


def pack_params(params):
    """Pack all parameters into one (SLAB_ROWS, 128) f32 slab (single full-lane DMA)."""
    w1, b1, g, be, w2, b2, wp, bp = params
    # rotation-major permutation: new index j*N_QUBITS + q  <-  old index q*PER_QUBIT + j
    perm = np.array([q * PER_QUBIT + j for j in range(PER_QUBIT) for q in range(N_QUBITS)])
    slab = jnp.zeros((SLAB_ROWS, LANES), jnp.float32)
    slab = slab.at[0:HIDDEN, COL_W1T:COL_W1T + INPUT_SIZE].set(w1.T)      # (32, 8)
    slab = slab.at[0:HIDDEN, COL_B1].set(b1[0])
    slab = slab.at[0:HIDDEN, COL_G].set(g[0])
    slab = slab.at[0:HIDDEN, COL_BE].set(be[0])
    slab = slab.at[ROW_W2T:ROW_W2T + N_QPARAMS, 0:HIDDEN].set(w2.T[perm, :])  # (12, 32)
    slab = slab.at[ROW_W2T:ROW_W2T + N_QPARAMS, COL_B2].set(b2[0, perm])
    slab = slab.at[ROW_W2T:ROW_W2T + N_QUBITS, COL_WP].set(wp[:, 0])
    slab = slab.at[ROW_W2T, COL_BP].set(bp[0, 0])
    return slab


def hybrid_forward(x, slab, *, mxu_dtype=jnp.float32, tile_b=None):
    """x: (B, INPUT_SIZE) f32 -> (B, 1) f32.  mxu_dtype=jnp.bfloat16 for v6e/v7x."""
    b = int(x.shape[0])
    b_pad = int(pl.cdiv(b, 128)) * 128
    if tile_b is None:   # biggest tile that divides the padded batch (amortize step cost)
        tile_b = 512 if b_pad % 512 == 0 else (256 if b_pad % 256 == 0 else 128)
    nb = b_pad // tile_b

    # feature-major, batch-on-lanes presentation of x (wrapper-side layout plumbing)
    xt = jnp.zeros((INPUT_SIZE, b_pad), jnp.float32).at[:, :b].set(x.astype(jnp.float32).T)

    cparams = pltpu.CompilerParams(
        dimension_semantics=("parallel",),           # megacore split on v7x
        vmem_limit_bytes=32 * 1024 * 1024)           # explicit; safe on v5e/v6e/v7x

    # pass 1: per-tile BN partial sums
    partials = pl.pallas_call(
        partial(_stats_kernel, b_true=b, tb=tile_b, mxu_dtype=mxu_dtype),
        grid=(nb,),
        in_specs=[pl.BlockSpec((INPUT_SIZE, tile_b), lambda i: (0, i)),
                  pl.BlockSpec((SLAB_ROWS, LANES), lambda i: (0, 0))],
        out_specs=pl.BlockSpec((1, HIDDEN, 2), lambda i: (i, 0, 0)),
        out_shape=jax.ShapeDtypeStruct((nb, HIDDEN, 2), jnp.float32),
        compiler_params=cparams,
    )(xt, slab)

    # pass 2: the rest of the forward, lane-dense (1, B_pad) output
    out = pl.pallas_call(
        partial(_main_kernel, b_true=b, mxu_dtype=mxu_dtype),
        grid=(nb,),
        in_specs=[pl.BlockSpec((INPUT_SIZE, tile_b), lambda i: (0, i)),
                  pl.BlockSpec((SLAB_ROWS, LANES), lambda i: (0, 0)),
                  pl.BlockSpec((nb, HIDDEN, 2), lambda i: (0, 0, 0))],
        out_specs=pl.BlockSpec((1, tile_b), lambda i: (0, i)),
        out_shape=jax.ShapeDtypeStruct((1, b_pad), jnp.float32),
        compiler_params=cparams,
    )(xt, slab, partials)

    return out[0, :b][:, None]                       # (B, 1)


def _reference_forward(x, params):
    """Pure-JAX reference with identical math (unpermuted parameters, batch-major)."""
    w1, b1, g, be, w2, b2, wp, bp = params
    h = jnp.maximum(x @ w1 + b1, 0.0)
    mean = jnp.mean(h, axis=0, keepdims=True)
    var = jnp.mean((h - mean) ** 2, axis=0, keepdims=True)
    h = (h - mean) / jnp.sqrt(var + BN_EPS) * g + be
    qp = h @ w2 + b2
    qp = qp.reshape(x.shape[0], N_QUBITS, PER_QUBIT)
    z = jnp.prod(jnp.cos(qp), axis=-1)               # (B, N_QUBITS)
    return z @ wp + bp


def init_params(key):
    ks = jax.random.split(key, 8)

    def lin(kw, kb, fan_in, fan_out):
        bound = 1.0 / jnp.sqrt(fan_in)
        w = jax.random.uniform(kw, (fan_in, fan_out), jnp.float32, -bound, bound)
        b = jax.random.uniform(kb, (1, fan_out), jnp.float32, -bound, bound)
        return w, b

    w1, b1 = lin(ks[0], ks[1], INPUT_SIZE, HIDDEN)
    g = jnp.ones((1, HIDDEN), jnp.float32)           # BatchNorm1d affine weight
    be = jnp.zeros((1, HIDDEN), jnp.float32)         # BatchNorm1d affine bias
    w2, b2 = lin(ks[2], ks[3], HIDDEN, N_QPARAMS)
    wp, bp = lin(ks[4], ks[5], N_QUBITS, 1)
    return (w1, b1, g, be, w2, b2, wp, bp)


if __name__ == "__main__":
    key = jax.random.PRNGKey(0)
    k_x, k_p = jax.random.split(key)
    x = jax.random.normal(k_x, (BATCH, INPUT_SIZE), jnp.float32)
    params = init_params(k_p)
    slab = pack_params(params)

    # f32 MXU path (faithful to the PyTorch module's numerics)
    out = jax.block_until_ready(hybrid_forward(x, slab))
    ref = jax.block_until_ready(_reference_forward(x, params))
    assert out.shape == (BATCH, 1), out.shape
    assert jnp.allclose(out, ref, rtol=2e-3, atol=2e-3), (out, ref)

    # bf16-MXU fast path (recommended on v6e/v7x): exercise compile + run; bf16 operand
    # rounding gives ~1e-2-level absolute differences, so only a sanity check here.
    out_bf16 = jax.block_until_ready(hybrid_forward(x, slab, mxu_dtype=jnp.bfloat16))
    assert out_bf16.shape == (BATCH, 1), out_bf16.shape
    assert bool(jnp.all(jnp.isfinite(out_bf16)))

    print("KERNEL_OK")
</pallas_src>

<mosaic_0001>
module attributes {stable_mosaic.version = 11 : i64} {
  func.func @_stats_kernel(%arg0: i32, %arg1: memref<8x128xf32, #tpu.memory_space<vmem>>, %arg2: memref<48x128xf32, #tpu.memory_space<vmem>>, %arg3: memref<1x32x2xf32, #tpu.memory_space<vmem>>) attributes {dimension_semantics = [#tpu.dimension_semantics<parallel>], iteration_bounds = array<i64: 1>, scalar_prefetch = 0 : i64, scratch_operands = 0 : i64, tpu.core_type = #tpu.core_type<tc>, window_params = [{transform_indices = @transform_0, window_bounds = array<i64: 8, 128>}, {pipeline_mode = #tpu.pipeline_mode<synchronous>, transform_indices = @transform_1, window_bounds = array<i64: 48, 128>}, {transform_indices = @transform_2, window_bounds = array<i64: 1, 32, 2>}]} {
    %c0 = arith.constant 0 : index
    %c0_0 = arith.constant 0 : index
    %0 = vector.load %arg1[%c0, %c0_0] : memref<8x128xf32, #tpu.memory_space<vmem>>, vector<8x128xf32>
    %c0_1 = arith.constant 0 : index
    %c0_2 = arith.constant 0 : index
    %1 = vector.load %arg2[%c0_1, %c0_2] : memref<48x128xf32, #tpu.memory_space<vmem>>, vector<32x8xf32>
    %c0_3 = arith.constant 0 : index
    %c8 = arith.constant 8 : index
    %2 = vector.load %arg2[%c0_3, %c8] : memref<48x128xf32, #tpu.memory_space<vmem>>, vector<32x1xf32>
    %cst = arith.constant dense<0.000000e+00> : vector<32x128xf32>
    %3 = tpu.matmul %1, %0, %cst {dimension_numbers = #tpu.dot_dimension_numbers<[1], [0], [0], [1], [0, 0, 1, 1], [], []>} : vector<32x8xf32>, vector<8x128xf32>, vector<32x128xf32> -> vector<32x128xf32>
    %4 = vector.broadcast %2 : vector<32x1xf32> to vector<32x128xf32>
    %5 = arith.addf %3, %4 : vector<32x128xf32>
    %cst_4 = arith.constant 0.000000e+00 : f32
    %6 = vector.broadcast %cst_4 : f32 to vector<32x128xf32>
    %7 = arith.maximumf %5, %6 : vector<32x128xf32>
    %8 = tpu.iota {dimensions = array<i32: 1>} : vector<1x128xi32>
    %c128_i32 = arith.constant 128 : i32
    %9 = arith.muli %arg0, %c128_i32 : i32
    %10 = vector.broadcast %9 : i32 to vector<1x128xi32>
    %11 = arith.addi %8, %10 : vector<1x128xi32>
    %c8_i32 = arith.constant 8 : i32
    %12 = vector.broadcast %c8_i32 : i32 to vector<1x128xi32>
    %13 = arith.cmpi slt, %11, %12 : vector<1x128xi32>
    %14 = arith.extui %13 : vector<1x128xi1> to vector<1x128xi32>
    %15 = arith.sitofp %14 : vector<1x128xi32> to vector<1x128xf32>
    %16 = vector.broadcast %15 : vector<1x128xf32> to vector<32x128xf32>
    %17 = arith.mulf %7, %16 : vector<32x128xf32>
    %cst_5 = arith.constant dense<0.000000e+00> : vector<32xf32>
    %18 = vector.multi_reduction <add>, %17, %cst_5 [1] : vector<32x128xf32> to vector<32xf32>
    %19 = vector.shape_cast %18 : vector<32xf32> to vector<32x1xf32>
    %20 = arith.mulf %17, %17 : vector<32x128xf32>
    %cst_6 = arith.constant dense<0.000000e+00> : vector<32xf32>
    %21 = vector.multi_reduction <add>, %20, %cst_6 [1] : vector<32x128xf32> to vector<32xf32>
    %22 = vector.shape_cast %21 : vector<32xf32> to vector<32x1xf32>
    %23 = tpu.concatenate %19, %22 in 1 : vector<32x1xf32>, vector<32x1xf32> -> vector<32x2xf32>
    %24 = vector.shape_cast %23 : vector<32x2xf32> to vector<1x32x2xf32>
    %c0_7 = arith.constant 0 : index
    %c0_8 = arith.constant 0 : index
    %c0_9 = arith.constant 0 : index
    %25 = vector.load %arg3[%c0_7, %c0_8, %c0_9] : memref<1x32x2xf32, #tpu.memory_space<vmem>>, vector<1x32x2xf32>
    tpu.vector_store %arg3[%c0_7, %c0_8, %c0_9], %24 {strides = array<i32>} : memref<1x32x2xf32, #tpu.memory_space<vmem>>, vector<1x32x2xf32>,
    return
  }
  func.func @transform_0(%arg0: i32) -> (i32, i32) {
    %c0_i32 = arith.constant 0 : i32
    %c0_i32_0 = arith.constant 0 : i32
    return %c0_i32, %arg0 : i32, i32
  }
  func.func @transform_1(%arg0: i32) -> (i32, i32) {
    %c0_i32 = arith.constant 0 : i32
    %c0_i32_0 = arith.constant 0 : i32
    %c0_i32_1 = arith.constant 0 : i32
    return %c0_i32, %c0_i32_0 : i32, i32
  }
  func.func @transform_2(%arg0: i32) -> (i32, i32, i32) {
    %c0_i32 = arith.constant 0 : i32
    %c0_i32_0 = arith.constant 0 : i32
    %c0_i32_1 = arith.constant 0 : i32
    return %arg0, %c0_i32, %c0_i32_0 : i32, i32, i32
  }
}

</mosaic_0001>

<bundles_post_ra>
// kernel: tpu_custom_call.1
= control target key start
LH: loop header
LB: loop body
LE: loop exit
PB: predicated region body
PF: predicated region fallthrough
CT: control target
= control target key end

     0   :  { %7 = vsyncpa [#allocation3], 0  ;;  %s348_s0 = inlined_call_operand.hbm [shape: f32[8,128], index: 0, kind: input, shape index: {}]   ;;  %s349_s1 = inlined_call_operand.hbm [shape: f32[48,128], index: 1, kind: input, shape index: {}]   ;;  %s350_s2 = inlined_call_operand.vmem [shape: f32[1,32,2], index: 2, kind: output, shape index: {}]  }
   0x1   :  { %8 = vsyncpa [#allocation5], 0  ;;  %s284_s9 = smov [#allocation2]   ;;  %s285_s11 = smov [#allocation4]  }
   0x2   :  { %s15_s10 = sshll.u32 %s284_s9, 4  ;;  %s24_s12 = sshll.u32 %s285_s11, 4  ;;  %s16_s10 = int_to_ptr.vmem [resolvable:$true] %s15_s10  ;;  %s305_s12 = int_to_ptr.vmem [resolvable:$true] %s24_s12 }
   0x3   :  { %s236_s15 = scalar_lea.hbm %s348_s0, 128 }
   0x4   :  { %p237_p0 = scmp.ne.s32.totalorder %s348_s0, %s236_s15  ;;  %p240_p1 = scmp.lt.u32.totalorder %s236_s15, %s348_s0 }
   0x6   :  { %p242_p2 = pnand %p240_p1, %p237_p0 }
   0x8   :  { %245 = shalt.err (!%p242_p2)
}
   0x9   :  { %s246_s20 = scalar_lea.vmem %s16_s10, 128  ;;  %p251_p4 = scmp.lt.s32.totalorder %s16_s10, %s16_s10 }
   0xa   :  { %p247_p3 = scmp.ne.s32.totalorder %s16_s10, %s246_s20  ;;  %p252_p5 = scmp.lt.s32.totalorder %s246_s20, %s246_s20 }
   0xc   :  { %p253_p6 = por %p252_p5, %p251_p4 }
   0xe   :  { %p254_p7 = pnand %p253_p6, %p247_p3 }
  0x10   :  { %257 = shalt.err (!%p254_p7)
}
  0x11   :  { %18 = dma.hbm_to_vmem [thread:$0]  %s348_s0, 128, %s16_s10, [#allocation3]  }
  0x12   :  { %s258_s25 = scalar_lea.hbm %s349_s1, 768 }
  0x13   :  { %p259_p8 = scmp.ne.s32.totalorder %s349_s1, %s258_s25  ;;  %p262_p9 = scmp.lt.u32.totalorder %s258_s25, %s349_s1 }
  0x15   :  { %p264_p10 = pnand %p262_p9, %p259_p8 }
  0x17   :  { %267 = shalt.err (!%p264_p10)
}
  0x18   :  { %s268_s30 = scalar_lea.vmem %s305_s12, 768  ;;  %p273_p12 = scmp.lt.s32.totalorder %s305_s12, %s305_s12 }
  0x19   :  { %p269_p11 = scmp.ne.s32.totalorder %s305_s12, %s268_s30  ;;  %p274_p13 = scmp.lt.s32.totalorder %s268_s30, %s268_s30 }
  0x1b   :  { %p275_p0 = por %p274_p13, %p273_p12 }
  0x1d   :  { %p276_p1 = pnand %p275_p0, %p269_p11 }
  0x1f   :  { %279 = shalt.err (!%p276_p1)
}
  0x20   :  { %s286_s0 = smov 128   ;;  %s287_s3 = smov 8  }
  0x21   :  { %30 = dma.hbm_to_vmem [thread:$0]  %s349_s1, 768, %s305_s12, [#allocation5], %s286_s0, %s286_s0, %s287_s3  }
  0x22   :  { %280 = dma.done.wait [#allocation3], 128  }
  0x23   :  { %281 = vsyncadd [#allocation3], 4294967168 }
  0x24   :  { %282 = dma.done.wait [#allocation5], 768  }
  0x25   :  { %283 = vsyncadd [#allocation5], 4294966528  ;;  %v288_v0 = vmov 8   ;;  %v37_v1 = vld [vmem:[#allocation2] sm:$0xff]  ;;  %v38_v2 = vld [vmem:[#allocation4] sm:$0xff]  ;;  %vm62_vm0 = vcmask 64512   ;;  %v160_v6 = vlaneseq }
  0x26   :  { %235 = vset.pattern.permute.xlu1 %v288_v0  ;;  %234 = vset.pattern.permute.xlu0 %v288_v0  ;;  %v40_v3 = vld [vmem:[#allocation4 + $0x10] sm:$0xff]  ;;  %v39_v4 = vld [vmem:[#allocation4 + $0x8] sm:$0xff]  ;;  %v41_v5 = vld [vmem:[#allocation4 + $0x18] sm:$0xff]  ;;  %v289_v20 = vmov 0.0   ;;  %vm192_vm2 = vcmask 7168   ;;  %vm197_vm3 = vcmask 15360  }
  0x27   :  { %218 = vmatprep.subr.mxu0 %v37_v1  ;;  %226 = vmatprep.subr.mxu1 %v37_v1  ;;  %v161_v9 = vand.u32 127, %v160_v6 }
  0x28   :  { %219 = vmatpush3.msra.mxu0 %v37_v1  ;;  %227 = vmatpush3.msra.mxu1 %v37_v1 }
  0x29   :  { %220 = vmatprep.mubr.msk.f32.mxu0 %vm62_vm0, %v38_v2  ;;  %223 = vmatprep.mubr.msk.f32.mxu1 %vm62_vm0, %v40_v3  ;;  %vm165_vm1 = vcmp.lt.s32.totalorder %v161_v9, 8 }
  0x2a   :  { %221 = vmatmul.mubr.msk.f32.vlgmr.msra.gmra.mrb[0].mxu0 %vm62_vm0, %v39_v4  ;;  %224 = vmatmul.mubr.msk.f32.vlgmr.msra.gmra.mrb[0].mxu1 %vm62_vm0, %v41_v5  ;;  %v212_v21 = vsel %vm165_vm1, 1.0, %v289_v20 }
  0x2b   :  { %54 = vperm.xlu1 %235, %v40_v3   ;;  %44 = vperm.xlu0 %234, %v38_v2  }
  0x2f   :  { %59 = vperm.xlu1 %235, %v41_v5   ;;  %49 = vperm.xlu0 %234, %v39_v4  }
  0xaa   :  { %v45_v7 = vpop.permute.xlu0 %44  ;;  %v55_v8 = vpop.permute.xlu1 %54 }
  0xae   :  { %v50_v10 = vpop.permute.xlu0 %49  ;;  %v60_v11 = vpop.permute.xlu1 %59 }
  0xfd   :  { %v222_v12 = vpop.f32.mrb[0].mxu0  ;;  %v225_v13 = vpop.f32.mrb[0].mxu1 }
  0xfe   :  { %v143_v14 = vadd.f32 %v222_v12, %v50_v10  ;;  %v153_v15 = vadd.f32 %v225_v13, %v60_v11  ;;  %v147_v16 = vpop.f32.mrb[1].mxu1  ;;  %v137_v17 = vpop.f32.mrb[1].mxu0 }
  0xff   :  { %v148_v18 = vadd.f32 %v147_v16, %v55_v8  ;;  %v138_v19 = vadd.f32 %v137_v17, %v45_v7 }
 0x100   :  { %v157_v22 = vmax.f32 %v143_v14, 0.0  ;;  %v159_v23 = vmax.f32 %v153_v15, 0.0 }
 0x101   :  { %v156_v24 = vmax.f32 %v138_v19, 0.0  ;;  %v158_v25 = vmax.f32 %v148_v18, 0.0 }
 0x102   :  { %v171_v26 = vmul.f32 %v212_v21, %v159_v23  ;;  %v169_v27 = vmul.f32 %v212_v21, %v157_v22 }
 0x103   :  { %v168_v28 = vmul.f32 %v212_v21, %v156_v24  ;;  %v170_v30 = vmul.f32 %v212_v21, %v158_v25 }
 0x104   :  { %178 = vadd.xlane.f32.xlu0 %v171_v26  ;;  %174 = vadd.xlane.f32.xlu1 %v169_v27  ;;  %v181_v32 = vmul.f32 %v169_v27, %v169_v27  ;;  %v183_v33 = vmul.f32 %v171_v26, %v171_v26 }
 0x105   :  { %v180_v29 = vmul.f32 %v168_v28, %v168_v28  ;;  %v182_v31 = vmul.f32 %v170_v30, %v170_v30 }
 0x108   :  { %172 = vadd.xlane.f32.xlu0 %v168_v28  ;;  %184 = vadd.xlane.f32.xlu1 %v180_v29 }
 0x10c   :  { %176 = vadd.xlane.f32.xlu0 %v170_v30  ;;  %188 = vadd.xlane.f32.xlu1 %v182_v31 }
 0x110   :  { %186 = vadd.xlane.f32.xlu0 %v181_v32 }
 0x114   :  { %190 = vadd.xlane.f32.xlu0 %v183_v33 }
 0x191   :  { %v179_v34 = vpop.xlane.xlu0 %178  ;;  %v175_v35 = vpop.xlane.xlu1 %174 }
 0x195   :  { %v173_v36 = vpop.xlane.xlu0 %172  ;;  %v185_v37 = vpop.xlane.xlu1 %184 }
 0x196   :  { %v193_v38 = vsel %vm192_vm2, %v173_v36, %v185_v37 }
 0x197   :  { %198 = vst.msk [vmem:[%s350_s2] sm:$0xff] %vm197_vm3, %v193_v38 }
 0x199   :  { %v177_v39 = vpop.xlane.xlu0 %176  ;;  %v189_v40 = vpop.xlane.xlu1 %188 }
 0x19a   :  { %v195_v41 = vsel %vm192_vm2, %v177_v39, %v189_v40 }
 0x19b   :  { %200 = vst.msk [vmem:[%s350_s2 + $0x10] sm:$0xff] %vm197_vm3, %v195_v41 }
 0x19d   :  { %v187_v42 = vpop.xlane.xlu0 %186 }
 0x19e   :  { %v194_v43 = vsel %vm192_vm2, %v175_v35, %v187_v42 }
 0x19f   :  { %199 = vst.msk [vmem:[%s350_s2 + $0x8] sm:$0xff] %vm197_vm3, %v194_v43 }
 0x1a1   :  { %v191_v44 = vpop.xlane.xlu0 %190 }
 0x1a2   :  { %v196_v45 = vsel %vm192_vm2, %v179_v34, %v191_v44 }
 0x1a3   :  { %201 = vst.msk [vmem:[%s350_s2 + $0x18] sm:$0xff] %vm197_vm3, %v196_v45 }
 0x1a4   :  { %206 = vsyncpa [#allocation3], 1 }
 0x1a5   :  { %207 = vsyncpa [#allocation5], 1 }

</bundles_post_ra>
